<compile_context>
chip_gen: v7x
topology: tpu7x:2x2x1
jax: 0.10.0
libtpu: 0.0.40
codegen_flags: <defaults>
</compile_context>

<pallas_src>
import functools

import jax
import jax.numpy as jnp
from jax.experimental import pallas as pl
from jax.experimental.pallas import tpu as pltpu


def _round_up(x, m):
    return ((x + m - 1) // m) * m


# -----------------------------------------------------------------------------
# Pass 1: pooled means + SE gates (tiled spatial reduction, cold path).
# -----------------------------------------------------------------------------
def _gates_kernel(xl_ref, xg_ref,
                  w1l_ref, w1g_ref, b1_ref,
                  w2l_ref, b2l_ref, w2g_ref, b2g_ref,
                  sl_ref, sg_ref,
                  suml_ref, sumg_ref,
                  *, inv_hw):
    t = pl.program_id(1)

    @pl.when(t == 0)
    def _init():
        suml_ref[...] = jnp.zeros_like(suml_ref)
        sumg_ref[...] = jnp.zeros_like(sumg_ref)

    # Partial spatial sums for this tile (cross-lane reduce; accumulate in f32).
    # Zero padding of the spatial axis contributes 0 to the sums.
    suml_ref[...] += jnp.sum(xl_ref[...].astype(jnp.float32), axis=-1, keepdims=True)
    sumg_ref[...] += jnp.sum(xg_ref[...].astype(jnp.float32), axis=-1, keepdims=True)

    @pl.when(t == pl.num_programs(1) - 1)
    def _finish():
        # adaptive_avg_pool2d((1,1)) == sum * (1/HW); 1/HW folded as a constant.
        pooled_l = suml_ref[...] * inv_hw                    # (Cl, 1)
        pooled_g = sumg_ref[...] * inv_hw                    # (Cg, 1)

        # conv1 (1x1 on the pooled vector).  w1* stored as (C_in, Ch):
        # h[j] = sum_i w1[i, j] * pooled[i]  ->  broadcast-mul + sublane reduce.
        h = (jnp.sum(w1l_ref[...] * pooled_l, axis=0, keepdims=True)
             + jnp.sum(w1g_ref[...] * pooled_g, axis=0, keepdims=True)
             + b1_ref[...])                                  # (1, Ch)
        h = jnp.maximum(h, 0.0)                              # ReLU

        # conv_a2l / conv_a2g (1x1) + sigmoid.  w2* stored as (C_out, Ch).
        zl = jnp.sum(w2l_ref[...] * h, axis=1, keepdims=True) + b2l_ref[...]  # (Cl, 1)
        zg = jnp.sum(w2g_ref[...] * h, axis=1, keepdims=True) + b2g_ref[...]  # (Cg, 1)
        sl_ref[...] = 1.0 / (1.0 + jnp.exp(-zl))
        sg_ref[...] = 1.0 / (1.0 + jnp.exp(-zg))


# -----------------------------------------------------------------------------
# Pass 2: channel-wise re-scale (hot path: pure DMA + VPU multiply).
# -----------------------------------------------------------------------------
def _scale_kernel(sl_ref, sg_ref, xl_ref, xg_ref, ol_ref, og_ref):
    # (Cl, T) * (Cl, 1) broadcast along the lane axis; dtype-safe stores.
    ol_ref[...] = (xl_ref[...].astype(jnp.float32) * sl_ref[...]).astype(ol_ref.dtype)
    og_ref[...] = (xg_ref[...].astype(jnp.float32) * sg_ref[...]).astype(og_ref.dtype)


def ffcse_block(x_l, x_g, params, *, tile_hw=None):
    """x_l: (B, Cl, H, W), x_g: (B, Cg, H, W)  ->  (out_l, out_g), same shapes."""
    B, Cl, H, W = x_l.shape
    Cg = x_g.shape[1]
    HW = H * W
    w1l, w1g, b1, w2l, b2l, w2g, b2g = params
    Ch = w1l.shape[1]

    # TODO(synk): handle the in_cl == 0 / in_cg == 0 branches (conv_a2l/conv_a2g
    # = None in PyTorch, branch output = 0); this path requires both branches.

    # Lane-dense spatial tiling: tile is a multiple of 128, capped at 1024,
    # spatial axis zero-padded up to a multiple of the tile.
    if tile_hw is None:
        tile_hw = min(_round_up(HW, 128), 1024)
    hw_pad = _round_up(HW, tile_hw)
    n_hw = hw_pad // tile_hw

    xl2 = x_l.reshape(B, Cl, HW)
    xg2 = x_g.reshape(B, Cg, HW)
    if hw_pad != HW:
        xl2 = jnp.pad(xl2, ((0, 0), (0, 0), (0, hw_pad - HW)))
        xg2 = jnp.pad(xg2, ((0, 0), (0, 0), (0, hw_pad - HW)))

    const = lambda shape: pl.BlockSpec(shape, lambda b, t: (0,) * len(shape))

    # ---- Pass 1: gates ------------------------------------------------------
    sl, sg = pl.pallas_call(
        functools.partial(_gates_kernel, inv_hw=1.0 / float(HW)),
        out_shape=(jax.ShapeDtypeStruct((B, Cl, 1), jnp.float32),
                   jax.ShapeDtypeStruct((B, Cg, 1), jnp.float32)),
        grid_spec=pltpu.PrefetchScalarGridSpec(
            num_scalar_prefetch=0,
            grid=(B, n_hw),
            in_specs=[
                pl.BlockSpec((None, Cl, tile_hw), lambda b, t: (b, 0, t)),
                pl.BlockSpec((None, Cg, tile_hw), lambda b, t: (b, 0, t)),
                const((Cl, Ch)),          # W1_l  (in, out)
                const((Cg, Ch)),          # W1_g  (in, out)
                const((1, Ch)),           # b1
                const((Cl, Ch)),          # W2_l  (out, in)
                const((Cl, 1)),           # b2_l
                const((Cg, Ch)),          # W2_g  (out, in)
                const((Cg, 1)),           # b2_g
            ],
            out_specs=[
                pl.BlockSpec((None, Cl, 1), lambda b, t: (b, 0, 0)),
                pl.BlockSpec((None, Cg, 1), lambda b, t: (b, 0, 0)),
            ],
            scratch_shapes=[pltpu.VMEM((Cl, 1), jnp.float32),
                            pltpu.VMEM((Cg, 1), jnp.float32)],
        ),
        compiler_params=pltpu.CompilerParams(
            dimension_semantics=("parallel", "arbitrary")),
    )(xl2, xg2, w1l, w1g, b1, w2l, b2l, w2g, b2g)

    # ---- Pass 2: spatially tiled channel re-scale ---------------------------
    out_l, out_g = pl.pallas_call(
        _scale_kernel,
        out_shape=(jax.ShapeDtypeStruct((B, Cl, hw_pad), x_l.dtype),
                   jax.ShapeDtypeStruct((B, Cg, hw_pad), x_g.dtype)),
        grid_spec=pltpu.PrefetchScalarGridSpec(
            num_scalar_prefetch=0,
            grid=(B, n_hw),
            in_specs=[
                pl.BlockSpec((None, Cl, 1), lambda b, t: (b, 0, 0)),
                pl.BlockSpec((None, Cg, 1), lambda b, t: (b, 0, 0)),
                pl.BlockSpec((None, Cl, tile_hw), lambda b, t: (b, 0, t)),
                pl.BlockSpec((None, Cg, tile_hw), lambda b, t: (b, 0, t)),
            ],
            out_specs=[
                pl.BlockSpec((None, Cl, tile_hw), lambda b, t: (b, 0, t)),
                pl.BlockSpec((None, Cg, tile_hw), lambda b, t: (b, 0, t)),
            ],
        ),
        compiler_params=pltpu.CompilerParams(
            dimension_semantics=("parallel", "parallel")),
    )(sl, sg, xl2, xg2)

    out_l = out_l[:, :, :HW].reshape(B, Cl, H, W)
    out_g = out_g[:, :, :HW].reshape(B, Cg, H, W)
    return out_l, out_g


def make_params(key, channels, ratio_g, r=16):
    """Deterministic synthetic weights matching FFCSE_block.__init__ shapes.

    conv1 weight is stored as (C_in, Ch) (transposed from PyTorch's (out,in,1,1));
    conv_a2l / conv_a2g weights are stored as (C_out, Ch) (PyTorch orientation,
    squeezed).  Biases are stored in the orientation the kernel consumes.
    """
    in_cg = int(channels * ratio_g)
    in_cl = channels - in_cg
    ch = channels // r
    ks = jax.random.split(key, 6)
    scale = 0.1
    w1 = scale * jax.random.normal(ks[0], (channels, ch), jnp.float32)   # (C, Ch)
    b1 = scale * jax.random.normal(ks[1], (1, ch), jnp.float32)
    w2l = scale * jax.random.normal(ks[2], (in_cl, ch), jnp.float32)     # (Cl, Ch)
    b2l = scale * jax.random.normal(ks[3], (in_cl, 1), jnp.float32)
    w2g = scale * jax.random.normal(ks[4], (in_cg, ch), jnp.float32)     # (Cg, Ch)
    b2g = scale * jax.random.normal(ks[5], (in_cg, 1), jnp.float32)
    w1l, w1g = w1[:in_cl], w1[in_cl:]
    return (w1l, w1g, b1, w2l, b2l, w2g, b2g)


def ffcse_ref(x_l, x_g, params):
    """Plain-JAX reference mirroring the PyTorch forward (full-precision dots)."""
    w1l, w1g, b1, w2l, b2l, w2g, b2g = params
    hp = jax.lax.Precision.HIGHEST
    x = jnp.concatenate([x_l, x_g], axis=1)                         # (B, C, H, W)
    pooled = jnp.mean(x, axis=(2, 3))                               # (B, C)
    w1 = jnp.concatenate([w1l, w1g], axis=0)                        # (C, Ch)
    h = jax.nn.relu(jnp.dot(pooled, w1, precision=hp) + b1)         # (B, Ch)
    sl = jax.nn.sigmoid(jnp.dot(h, w2l.T, precision=hp) + b2l[:, 0])  # (B, Cl)
    sg = jax.nn.sigmoid(jnp.dot(h, w2g.T, precision=hp) + b2g[:, 0])  # (B, Cg)
    return x_l * sl[:, :, None, None], x_g * sg[:, :, None, None]


if __name__ == "__main__":
    channels, ratio_g = 64, 0.5
    B, H, W = 2, 16, 16
    in_cg = int(channels * ratio_g)
    in_cl = channels - in_cg

    key = jax.random.PRNGKey(0)
    k_xl, k_xg, k_p = jax.random.split(key, 3)
    x_l = jax.random.normal(k_xl, (B, in_cl, H, W), jnp.float32)
    x_g = jax.random.normal(k_xg, (B, in_cg, H, W), jnp.float32)
    params = make_params(k_p, channels, ratio_g)

    out_l, out_g = ffcse_block(x_l, x_g, params)
    (out_l, out_g) = jax.block_until_ready((out_l, out_g))

    ref_l, ref_g = ffcse_ref(x_l, x_g, params)
    assert jnp.allclose(out_l, ref_l, atol=1e-5, rtol=1e-5)
    assert jnp.allclose(out_g, ref_g, atol=1e-5, rtol=1e-5)
    print("KERNEL_OK")
</pallas_src>

<mosaic_0001>
module attributes {stable_mosaic.version = 11 : i64} {
  func.func @_gates_kernel(%arg0: i32, %arg1: i32, %arg2: memref<1x32x256xf32, #tpu.memory_space<vmem>>, %arg3: memref<1x32x256xf32, #tpu.memory_space<vmem>>, %arg4: memref<32x4xf32, #tpu.memory_space<vmem>>, %arg5: memref<32x4xf32, #tpu.memory_space<vmem>>, %arg6: memref<1x4xf32, #tpu.memory_space<vmem>>, %arg7: memref<32x4xf32, #tpu.memory_space<vmem>>, %arg8: memref<32x1xf32, #tpu.memory_space<vmem>>, %arg9: memref<32x4xf32, #tpu.memory_space<vmem>>, %arg10: memref<32x1xf32, #tpu.memory_space<vmem>>, %arg11: memref<1x32x1xf32, #tpu.memory_space<vmem>>, %arg12: memref<1x32x1xf32, #tpu.memory_space<vmem>>, %arg13: memref<32x1xf32, #tpu.memory_space<vmem>>, %arg14: memref<32x1xf32, #tpu.memory_space<vmem>>) attributes {dimension_semantics = [#tpu.dimension_semantics<parallel>, #tpu.dimension_semantics<arbitrary>], iteration_bounds = array<i64: 2, 1>, scalar_prefetch = 0 : i64, scratch_operands = 2 : i64, tpu.core_type = #tpu.core_type<tc>, window_params = [{transform_indices = @transform_0, window_bounds = array<i64: 1, 32, 256>}, {transform_indices = @transform_1, window_bounds = array<i64: 1, 32, 256>}, {pipeline_mode = #tpu.pipeline_mode<synchronous>, transform_indices = @transform_2, window_bounds = array<i64: 32, 4>}, {pipeline_mode = #tpu.pipeline_mode<synchronous>, transform_indices = @transform_3, window_bounds = array<i64: 32, 4>}, {pipeline_mode = #tpu.pipeline_mode<synchronous>, transform_indices = @transform_4, window_bounds = array<i64: 1, 4>}, {pipeline_mode = #tpu.pipeline_mode<synchronous>, transform_indices = @transform_5, window_bounds = array<i64: 32, 4>}, {pipeline_mode = #tpu.pipeline_mode<synchronous>, transform_indices = @transform_6, window_bounds = array<i64: 32, 1>}, {pipeline_mode = #tpu.pipeline_mode<synchronous>, transform_indices = @transform_7, window_bounds = array<i64: 32, 4>}, {pipeline_mode = #tpu.pipeline_mode<synchronous>, transform_indices = @transform_8, window_bounds = array<i64: 32, 1>}, {transform_indices = @transform_9, window_bounds = array<i64: 1, 32, 1>}, {transform_indices = @transform_10, window_bounds = array<i64: 1, 32, 1>}]} {
    %c0_i32 = arith.constant 0 : i32
    %0 = arith.cmpi eq, %arg1, %c0_i32 : i32
    %1 = arith.extui %0 : i1 to i32
    %c0_i32_0 = arith.constant 0 : i32
    %2 = arith.cmpi ne, %1, %c0_i32_0 : i32
    scf.if %2 {
      %cst_17 = arith.constant 0.000000e+00 : f32
      %20 = vector.broadcast %cst_17 : f32 to vector<32x1xf32>
      %c0_18 = arith.constant 0 : index
      %c0_19 = arith.constant 0 : index
      %21 = vector.load %arg13[%c0_18, %c0_19] : memref<32x1xf32, #tpu.memory_space<vmem>>, vector<32x1xf32>
      tpu.vector_store %arg13[%c0_18, %c0_19], %20 {strides = array<i32>} : memref<32x1xf32, #tpu.memory_space<vmem>>, vector<32x1xf32>,
      %cst_20 = arith.constant 0.000000e+00 : f32
      %22 = vector.broadcast %cst_20 : f32 to vector<32x1xf32>
      %c0_21 = arith.constant 0 : index
      %c0_22 = arith.constant 0 : index
      %23 = vector.load %arg14[%c0_21, %c0_22] : memref<32x1xf32, #tpu.memory_space<vmem>>, vector<32x1xf32>
      tpu.vector_store %arg14[%c0_21, %c0_22], %22 {strides = array<i32>} : memref<32x1xf32, #tpu.memory_space<vmem>>, vector<32x1xf32>,
    } else {
    }
    %c0 = arith.constant 0 : index
    %c0_1 = arith.constant 0 : index
    %3 = vector.load %arg13[%c0, %c0_1] : memref<32x1xf32, #tpu.memory_space<vmem>>, vector<32x1xf32>
    %c0_2 = arith.constant 0 : index
    %c0_3 = arith.constant 0 : index
    %c0_4 = arith.constant 0 : index
    %4 = vector.load %arg2[%c0_2, %c0_3, %c0_4] : memref<1x32x256xf32, #tpu.memory_space<vmem>>, vector<1x32x256xf32>
    %5 = vector.shape_cast %4 : vector<1x32x256xf32> to vector<32x256xf32>
    %cst = arith.constant dense<0.000000e+00> : vector<32xf32>
    %6 = vector.multi_reduction <add>, %5, %cst [1] : vector<32x256xf32> to vector<32xf32>
    %7 = vector.shape_cast %6 : vector<32xf32> to vector<32x1xf32>
    %8 = arith.addf %3, %7 : vector<32x1xf32>
    %c0_5 = arith.constant 0 : index
    %c0_6 = arith.constant 0 : index
    %9 = vector.load %arg13[%c0_5, %c0_6] : memref<32x1xf32, #tpu.memory_space<vmem>>, vector<32x1xf32>
    tpu.vector_store %arg13[%c0_5, %c0_6], %8 {strides = array<i32>} : memref<32x1xf32, #tpu.memory_space<vmem>>, vector<32x1xf32>,
    %c0_7 = arith.constant 0 : index
    %c0_8 = arith.constant 0 : index
    %10 = vector.load %arg14[%c0_7, %c0_8] : memref<32x1xf32, #tpu.memory_space<vmem>>, vector<32x1xf32>
    %c0_9 = arith.constant 0 : index
    %c0_10 = arith.constant 0 : index
    %c0_11 = arith.constant 0 : index
    %11 = vector.load %arg3[%c0_9, %c0_10, %c0_11] : memref<1x32x256xf32, #tpu.memory_space<vmem>>, vector<1x32x256xf32>
    %12 = vector.shape_cast %11 : vector<1x32x256xf32> to vector<32x256xf32>
    %cst_12 = arith.constant dense<0.000000e+00> : vector<32xf32>
    %13 = vector.multi_reduction <add>, %12, %cst_12 [1] : vector<32x256xf32> to vector<32xf32>
    %14 = vector.shape_cast %13 : vector<32xf32> to vector<32x1xf32>
    %15 = arith.addf %10, %14 : vector<32x1xf32>
    %c0_13 = arith.constant 0 : index
    %c0_14 = arith.constant 0 : index
    %16 = vector.load %arg14[%c0_13, %c0_14] : memref<32x1xf32, #tpu.memory_space<vmem>>, vector<32x1xf32>
    tpu.vector_store %arg14[%c0_13, %c0_14], %15 {strides = array<i32>} : memref<32x1xf32, #tpu.memory_space<vmem>>, vector<32x1xf32>,
    %c0_i32_15 = arith.constant 0 : i32
    %17 = arith.cmpi eq, %arg1, %c0_i32_15 : i32
    %18 = arith.extui %17 : i1 to i32
    %c0_i32_16 = arith.constant 0 : i32
    %19 = arith.cmpi ne, %18, %c0_i32_16 : i32
    scf.if %19 {
      %c0_17 = arith.constant 0 : index
      %c0_18 = arith.constant 0 : index
      %20 = vector.load %arg13[%c0_17, %c0_18] : memref<32x1xf32, #tpu.memory_space<vmem>>, vector<32x1xf32>
      %cst_19 = arith.constant 3.906250e-03 : f32
      %21 = vector.broadcast %cst_19 : f32 to vector<32x1xf32>
      %22 = arith.mulf %20, %21 : vector<32x1xf32>
      %c0_20 = arith.constant 0 : index
      %c0_21 = arith.constant 0 : index
      %23 = vector.load %arg14[%c0_20, %c0_21] : memref<32x1xf32, #tpu.memory_space<vmem>>, vector<32x1xf32>
      %cst_22 = arith.constant 3.906250e-03 : f32
      %24 = vector.broadcast %cst_22 : f32 to vector<32x1xf32>
      %25 = arith.mulf %23, %24 : vector<32x1xf32>
      %c0_23 = arith.constant 0 : index
      %c0_24 = arith.constant 0 : index
      %26 = vector.load %arg4[%c0_23, %c0_24] : memref<32x4xf32, #tpu.memory_space<vmem>>, vector<32x4xf32>
      %27 = vector.broadcast %22 : vector<32x1xf32> to vector<32x4xf32>
      %28 = arith.mulf %26, %27 : vector<32x4xf32>
      %cst_25 = arith.constant dense<0.000000e+00> : vector<4xf32>
      %29 = vector.multi_reduction <add>, %28, %cst_25 [0] : vector<32x4xf32> to vector<4xf32>
      %30 = vector.shape_cast %29 : vector<4xf32> to vector<1x4xf32>
      %c0_26 = arith.constant 0 : index
      %c0_27 = arith.constant 0 : index
      %31 = vector.load %arg5[%c0_26, %c0_27] : memref<32x4xf32, #tpu.memory_space<vmem>>, vector<32x4xf32>
      %32 = vector.broadcast %25 : vector<32x1xf32> to vector<32x4xf32>
      %33 = arith.mulf %31, %32 : vector<32x4xf32>
      %cst_28 = arith.constant dense<0.000000e+00> : vector<4xf32>
      %34 = vector.multi_reduction <add>, %33, %cst_28 [0] : vector<32x4xf32> to vector<4xf32>
      %35 = vector.shape_cast %34 : vector<4xf32> to vector<1x4xf32>
      %36 = arith.addf %30, %35 : vector<1x4xf32>
      %c0_29 = arith.constant 0 : index
      %c0_30 = arith.constant 0 : index
      %37 = vector.load %arg6[%c0_29, %c0_30] : memref<1x4xf32, #tpu.memory_space<vmem>>, vector<1x4xf32>
      %38 = arith.addf %36, %37 : vector<1x4xf32>
      %cst_31 = arith.constant 0.000000e+00 : f32
      %39 = vector.broadcast %cst_31 : f32 to vector<1x4xf32>
      %40 = arith.maximumf %38, %39 : vector<1x4xf32>
      %c0_32 = arith.constant 0 : index
      %c0_33 = arith.constant 0 : index
      %41 = vector.load %arg7[%c0_32, %c0_33] : memref<32x4xf32, #tpu.memory_space<vmem>>, vector<32x4xf32>
      %42 = vector.broadcast %40 : vector<1x4xf32> to vector<32x4xf32>
      %43 = arith.mulf %41, %42 : vector<32x4xf32>
      %cst_34 = arith.constant dense<0.000000e+00> : vector<32xf32>
      %44 = vector.multi_reduction <add>, %43, %cst_34 [1] : vector<32x4xf32> to vector<32xf32>
      %45 = vector.shape_cast %44 : vector<32xf32> to vector<32x1xf32>
      %c0_35 = arith.constant 0 : index
      %c0_36 = arith.constant 0 : index
      %46 = vector.load %arg8[%c0_35, %c0_36] : memref<32x1xf32, #tpu.memory_space<vmem>>, vector<32x1xf32>
      %47 = arith.addf %45, %46 : vector<32x1xf32>
      %c0_37 = arith.constant 0 : index
      %c0_38 = arith.constant 0 : index
      %48 = vector.load %arg9[%c0_37, %c0_38] : memref<32x4xf32, #tpu.memory_space<vmem>>, vector<32x4xf32>
      %49 = vector.broadcast %40 : vector<1x4xf32> to vector<32x4xf32>
      %50 = arith.mulf %48, %49 : vector<32x4xf32>
      %cst_39 = arith.constant dense<0.000000e+00> : vector<32xf32>
      %51 = vector.multi_reduction <add>, %50, %cst_39 [1] : vector<32x4xf32> to vector<32xf32>
      %52 = vector.shape_cast %51 : vector<32xf32> to vector<32x1xf32>
      %c0_40 = arith.constant 0 : index
      %c0_41 = arith.constant 0 : index
      %53 = vector.load %arg10[%c0_40, %c0_41] : memref<32x1xf32, #tpu.memory_space<vmem>>, vector<32x1xf32>
      %54 = arith.addf %52, %53 : vector<32x1xf32>
      %cst_42 = arith.constant 0.000000e+00 : f32
      %55 = vector.broadcast %cst_42 : f32 to vector<32x1xf32>
      %56 = arith.subf %55, %47 : vector<32x1xf32>
      %57 = math.exp %56 : vector<32x1xf32>
      %cst_43 = arith.constant 1.000000e+00 : f32
      %58 = vector.broadcast %cst_43 : f32 to vector<32x1xf32>
      %59 = arith.addf %58, %57 : vector<32x1xf32>
      %cst_44 = arith.constant 1.000000e+00 : f32
      %60 = vector.broadcast %cst_44 : f32 to vector<32x1xf32>
      %61 = arith.divf %60, %59 : vector<32x1xf32>
      %c0_45 = arith.constant 0 : index
      %c0_46 = arith.constant 0 : index
      %c0_47 = arith.constant 0 : index
      %62 = vector.load %arg11[%c0_45, %c0_46, %c0_47] : memref<1x32x1xf32, #tpu.memory_space<vmem>>, vector<1x32x1xf32>
      %63 = vector.shape_cast %62 : vector<1x32x1xf32> to vector<32x1xf32>
      %64 = vector.shape_cast %61 : vector<32x1xf32> to vector<1x32x1xf32>
      tpu.vector_store %arg11[%c0_45, %c0_46, %c0_47], %64 {strides = array<i32>} : memref<1x32x1xf32, #tpu.memory_space<vmem>>, vector<1x32x1xf32>,
      %cst_48 = arith.constant 0.000000e+00 : f32
      %65 = vector.broadcast %cst_48 : f32 to vector<32x1xf32>
      %66 = arith.subf %65, %54 : vector<32x1xf32>
      %67 = math.exp %66 : vector<32x1xf32>
      %cst_49 = arith.constant 1.000000e+00 : f32
      %68 = vector.broadcast %cst_49 : f32 to vector<32x1xf32>
      %69 = arith.addf %68, %67 : vector<32x1xf32>
      %cst_50 = arith.constant 1.000000e+00 : f32
      %70 = vector.broadcast %cst_50 : f32 to vector<32x1xf32>
      %71 = arith.divf %70, %69 : vector<32x1xf32>
      %c0_51 = arith.constant 0 : index
      %c0_52 = arith.constant 0 : index
      %c0_53 = arith.constant 0 : index
      %72 = vector.load %arg12[%c0_51, %c0_52, %c0_53] : memref<1x32x1xf32, #tpu.memory_space<vmem>>, vector<1x32x1xf32>
      %73 = vector.shape_cast %72 : vector<1x32x1xf32> to vector<32x1xf32>
      %74 = vector.shape_cast %71 : vector<32x1xf32> to vector<1x32x1xf32>
      tpu.vector_store %arg12[%c0_51, %c0_52, %c0_53], %74 {strides = array<i32>} : memref<1x32x1xf32, #tpu.memory_space<vmem>>, vector<1x32x1xf32>,
    } else {
    }
    return
  }
  func.func @transform_0(%arg0: i32, %arg1: i32) -> (i32, i32, i32) {
    %c0_i32 = arith.constant 0 : i32
    %c0_i32_0 = arith.constant 0 : i32
    return %arg0, %c0_i32, %arg1 : i32, i32, i32
  }
  func.func @transform_1(%arg0: i32, %arg1: i32) -> (i32, i32, i32) {
    %c0_i32 = arith.constant 0 : i32
    %c0_i32_0 = arith.constant 0 : i32
    return %arg0, %c0_i32, %arg1 : i32, i32, i32
  }
  func.func @transform_2(%arg0: i32, %arg1: i32) -> (i32, i32) {
    %c0_i32 = arith.constant 0 : i32
    %c0_i32_0 = arith.constant 0 : i32
    %c0_i32_1 = arith.constant 0 : i32
    return %c0_i32, %c0_i32_0 : i32, i32
  }
  func.func @transform_3(%arg0: i32, %arg1: i32) -> (i32, i32) {
    %c0_i32 = arith.constant 0 : i32
    %c0_i32_0 = arith.constant 0 : i32
    %c0_i32_1 = arith.constant 0 : i32
    return %c0_i32, %c0_i32_0 : i32, i32
  }
  func.func @transform_4(%arg0: i32, %arg1: i32) -> (i32, i32) {
    %c0_i32 = arith.constant 0 : i32
    %c0_i32_0 = arith.constant 0 : i32
    %c0_i32_1 = arith.constant 0 : i32
    return %c0_i32, %c0_i32_0 : i32, i32
  }
  func.func @transform_5(%arg0: i32, %arg1: i32) -> (i32, i32) {
    %c0_i32 = arith.constant 0 : i32
    %c0_i32_0 = arith.constant 0 : i32
    %c0_i32_1 = arith.constant 0 : i32
    return %c0_i32, %c0_i32_0 : i32, i32
  }
  func.func @transform_6(%arg0: i32, %arg1: i32) -> (i32, i32) {
    %c0_i32 = arith.constant 0 : i32
    %c0_i32_0 = arith.constant 0 : i32
    %c0_i32_1 = arith.constant 0 : i32
    return %c0_i32, %c0_i32_0 : i32, i32
  }
  func.func @transform_7(%arg0: i32, %arg1: i32) -> (i32, i32) {
    %c0_i32 = arith.constant 0 : i32
    %c0_i32_0 = arith.constant 0 : i32
    %c0_i32_1 = arith.constant 0 : i32
    return %c0_i32, %c0_i32_0 : i32, i32
  }
  func.func @transform_8(%arg0: i32, %arg1: i32) -> (i32, i32) {
    %c0_i32 = arith.constant 0 : i32
    %c0_i32_0 = arith.constant 0 : i32
    %c0_i32_1 = arith.constant 0 : i32
    return %c0_i32, %c0_i32_0 : i32, i32
  }
  func.func @transform_9(%arg0: i32, %arg1: i32) -> (i32, i32, i32) {
    %c0_i32 = arith.constant 0 : i32
    %c0_i32_0 = arith.constant 0 : i32
    %c0_i32_1 = arith.constant 0 : i32
    return %arg0, %c0_i32, %c0_i32_0 : i32, i32, i32
  }
  func.func @transform_10(%arg0: i32, %arg1: i32) -> (i32, i32, i32) {
    %c0_i32 = arith.constant 0 : i32
    %c0_i32_0 = arith.constant 0 : i32
    %c0_i32_1 = arith.constant 0 : i32
    return %arg0, %c0_i32, %c0_i32_0 : i32, i32, i32
  }
}

</mosaic_0001>

<bundles_post_ra>
// kernel: tpu_custom_call.1
= control target key start
LH: loop header
LB: loop body
LE: loop exit
PB: predicated region body
PF: predicated region fallthrough
CT: control target
= control target key end

     0   :  { %16 = vsyncpa [#allocation5], 0  ;;  %s1390_s0 = inlined_call_operand.vmem [shape: f32[2,32,256], index: 0, kind: input, shape index: {}]   ;;  %s1391_s1 = inlined_call_operand.hbm [shape: f32[2,32,256], index: 1, kind: input, shape index: {}]   ;;  %s1392_s2 = inlined_call_operand.vmem [shape: f32[32,4], index: 2, kind: input, shape index: {}]   ;;  %s1393_s3 = inlined_call_operand.vmem [shape: f32[32,4], index: 3, kind: input, shape index: {}]   ;;  %s1394_s4 = inlined_call_operand.vmem [shape: f32[1,4], index: 4, kind: input, shape index: {}]   ;;  %s1395_s5 = inlined_call_operand.vmem [shape: f32[32,4], index: 5, kind: input, shape index: {}]   ;;  %s1396_s6 = inlined_call_operand.vmem [shape: f32[32,1], index: 6, kind: input, shape index: {}]   ;;  %s1397_s7 = inlined_call_operand.vmem [shape: f32[32,4], index: 7, kind: input, shape index: {}]   ;;  %s1398_s8 = inlined_call_operand.vmem [shape: f32[32,1], index: 8, kind: input, shape index: {}]   ;;  %s1399_s9 = inlined_call_operand.vmem [shape: f32[2,32,1], index: 9, kind: output, shape index: {0}]   ;;  %s1400_s10 = inlined_call_operand.vmem [shape: f32[2,32,1], index: 10, kind: output, shape index: {1}]  }
   0x1   :  { %18 = vsyncpa [#allocation5 + $0x1], 0  ;;  %s1131_s13 = smov 0   ;;  %s1133_s14 = smov 0  }
   0x2   :  { %s1135_s15 = smov 0   ;;  %s1137_s16 = smov 0  }
   0x3   :  { %s1139_s17 = smov 0   ;;  %s1141_s18 = smov 0  }
   0x4 LB: > { %s875_s19 = sadd.s32 4294967295, %s1069_s18   ;;  %s36_s20 = sadd.s32 1, %s1065_s17  ;;  %s1069_s18 = sphi %s1141_s18, %s24_s18   ;;  %s1065_s17 = sphi %s1139_s17, %s1408_s17   ;;  %s1061_s16 = sphi %s1137_s16, %s1407_s16   ;;  %s1057_s15 = sphi %s1135_s15, %s1406_s15   ;;  %s1053_s14 = sphi %s1133_s14, %s1405_s14   ;;  %s1049_s13 = sphi %s1131_s13, %s1404_s13  }
   0x5   : > { %p38_p0 = scmp.ge.s32.totalorder %s36_s20, 2  ;;  %s73_s21 = sadd.s32 1, %s1057_s15 }
   0x6   : > { %p80_p1 = scmp.ne.s32.totalorder %s1057_s15, %s1053_s14  ;;  %p81_p2 = scmp.eq.s32.totalorder %s1069_s18, 0 }
   0x7   : > { %s1410_s20 = smov (%p38_p0, %s36_s20), 0  ;;  %p86_p4 = scmp.ne.s32.totalorder %s1053_s14, %s1049_s13 }
   0x8   : > { %p1167_p3 = por %p81_p2, %p80_p1  ;;  %s68_s23 = ssub.s32 %s1065_s17, %s1410_s20 }
   0x9   : > { %p87_p5 = scmp.eq.s32.totalorder %s875_s19, 0  ;;  %p71_p6 = scmp.eq.s32.totalorder %s68_s23, 0 }
   0xa   : > { %p902_p8 = scmp.lt.s32.totalorder %s1069_s18, 2  ;;  %s343_s26 = sand.u32 1, %s1057_s15  }
   0xb   : > { %p1174_p7 = por %p87_p5, %p86_p4  ;;  %s892_s27 = sshll.u32 %s1065_s17, 10 }
   0xc   : > { %s1180_s25 = scalar_select %p71_p6, %s1057_s15, %s73_s21  }
   0xd   : > { %s879_s28 = sshll.u32 %s343_s26, 6  ;;  %s1187_s11 = scalar_lea.hbm %s1391_s1, %s892_s27 }
   0xe   : > { %s347_s12 = scalar_lea.vmem [#allocation4], %s879_s28  ;;  %p1191_p9 = pnand %p902_p8, %p1167_p3 }
   0xf   : > { %s356_s13 = sshll.u32 %s347_s12, 4  ;;  %s1197_s21 = scalar_lea.sflag [#allocation5], %s343_s26  ;;  %s1195_s13 = int_to_ptr.vmem [resolvable:$true] %s356_s13 }
  0x10   : > { %s989_s23 = scalar_lea.hbm %s1187_s11, 1024  ;;  %p991_p11 = pneg %p1191_p9 }
  0x11   : > { %p990_p10 = scmp.ne.s32.totalorder %s1187_s11, %s989_s23  ;;  %s994_s28 = scalar_lea.hbm %s1391_s1, 2048 }
  0x12   : > { %p995_p0 = scmp.lt.u32.totalorder %s1187_s11, %s1391_s1  ;;  %p996_p1 = scmp.lt.u32.totalorder %s994_s28, %s989_s23 }
  0x13   : > { %p992_p12 = pnand %p991_p11, %p990_p10  ;;  %p998_p3 = scmp.lt.u32.totalorder %s989_s23, %s1187_s11 }
  0x14   : > { %p997_p2 = por %p996_p1, %p995_p0 }
  0x15   : > { %p993_p13 = pneg %p992_p12 }
  0x16   : > { %p999_p4 = por %p998_p3, %p997_p2 }
  0x18   : > { %p1000_p5 = pnand %p999_p4, %p993_p13 }
  0x1a   : > { %1003 = shalt.err (!%p1000_p5)
}
  0x1b   : > { %s1004_s26 = scalar_lea.vmem %s1195_s13, 1024  ;;  %s1071_s12 = smov [#allocation4]  }
  0x1c   : > { %p1005_p6 = scmp.ne.s32.totalorder %s1195_s13, %s1004_s26  ;;  %s1009_s27 = sshll.u32 %s1071_s12, 4  ;;  %s1010_s27 = int_to_ptr.vmem [resolvable:$false] %s1009_s27 }
  0x1d   : > { %s1011_s22 = scalar_lea.vmem %s1010_s27, 2048  ;;  %p1012_p12 = scmp.lt.s32.totalorder %s1195_s13, %s1010_s27 }
  0x1e   : > { %p1007_p8 = pnand %p1005_p6, %p991_p11  ;;  %p1013_p0 = scmp.lt.s32.totalorder %s1011_s22, %s1004_s26 }
  0x20   : > { %p1008_p10 = pneg %p1007_p8  ;;  %p1014_p1 = por %p1013_p0, %p1012_p12 }
  0x22   : > { %p1015_p2 = pnand %p1014_p1, %p1008_p10 }
  0x24   : > { %1018 = shalt.err (!%p1015_p2)
}
  0x25   : > { %s1072_s23 = smov 256   ;;  %s1073_s28 = smov 16  }
  0x26   : > { %901 = dma.hbm_to_vmem [thread:$0]  (!%p1191_p9), %s1187_s11, 1024, %s1195_s13, %s1197_s21, %s1072_s23, %s1072_s23, %s1073_s28  }
  0x27   : > { %p882_p11 = scmp.ge.s32.totalorder %s1069_s18, 1  ;;  %p364_p13 = scmp.lt.s32.totalorder %s1069_s18, 3 }
  0x29   : > { %p365_p3 = pnand %p882_p11, %p364_p13 }
  0x2a   : > { %s370_s29 = sand.u32 (!%p365_p3), 1, %s1053_s14  }
  0x2b   : > { %368 = sbr.rel (%p365_p3) target bundleno = 585 (0x249), region = 56  ;;  %s883_s30 = sshll.u32 (!%p365_p3), %s370_s29, 6 }
  0x2c   : > { %s371_s26 = scalar_lea.sflag (!%p365_p3), [#allocation5], %s370_s29  ;;  %s1228_s12 = scalar_lea.vmem (!%p365_p3), [#allocation4], %s883_s30 }
  0x32   : > { %1044 = dma.done.wait (%p1174_p7), %s371_s26, 1024  }
  0x33   : > { %1046 = vsyncadd (%p1174_p7), %s371_s26, 4294966272  ;;  %p426_p4 = scmp.lt.s32.totalorder %s1061_s16, 1  ;;  %vm450_vm0 = vcmask 7168   ;;  %v1074_v0 = vmov 0.0   ;;  %v496_v6 = vld [vmem:[%s1228_s12] sm:$0xff]  ;;  %v497_v7 = vld [vmem:[%s1228_s12 + $0x8] sm:$0xff] }
  0x34   : > { %451 = vst.msk [vmem:[#allocation2] sm:$0xff] %vm450_vm0, %v1074_v0  ;;  %452 = vst.msk [vmem:[#allocation2 + $0x8] sm:$0xff] %vm450_vm0, %v1074_v0  ;;  %v504_v8 = vadd.f32 %v497_v7, %v496_v6  ;;  %v498_v9 = vld [vmem:[%s1228_s12 + $0x10] sm:$0xff]  ;;  %v499_v10 = vld [vmem:[%s1228_s12 + $0x18] sm:$0xff]  ;;  %v1075_v25 = vmov 0   ;;  %vm571_vm1 = vcmask 31744  }
  0x35   : > { %453 = vst.msk [vmem:[#allocation2 + $0x10] sm:$0xff] %vm450_vm0, %v1074_v0  ;;  %454 = vst.msk [vmem:[#allocation2 + $0x18] sm:$0xff] %vm450_vm0, %v1074_v0  ;;  %s1412_s16 = smov (!%p426_p4, %s1061_s16), 1  ;;  %v507_v12 = vadd.f32 %v499_v10, %v498_v9  ;;  %v500_v15 = vld [vmem:[%s1228_s12 + $0x20] sm:$0xff]  ;;  %v501_v16 = vld [vmem:[%s1228_s12 + $0x28] sm:$0xff]  ;;  %955 = vset.pattern.permute.xlu0 %v1075_v25  ;;  %956 = vset.pattern.permute.xlu1 %v1075_v25 }
  0x36   : > { %455 = vst.msk [vmem:[#allocation3] sm:$0xff] %vm450_vm0, %v1074_v0  ;;  %456 = vst.msk [vmem:[#allocation3 + $0x8] sm:$0xff] %vm450_vm0, %v1074_v0  ;;  %s893_s24 = sshll.u32 %s1412_s16, 6  ;;  %505 = vadd.xlane.f32.xlu1 %v504_v8  ;;  %v510_v18 = vadd.f32 %v501_v16, %v500_v15  ;;  %v502_v21 = vld [vmem:[%s1228_s12 + $0x30] sm:$0xff]  ;;  %v503_v22 = vld [vmem:[%s1228_s12 + $0x38] sm:$0xff]  ;;  %s894_s13 = sshll.u32 %s1412_s16, 5 }
  0x37   : > { %457 = vst.msk [vmem:[#allocation3 + $0x10] sm:$0xff] %vm450_vm0, %v1074_v0  ;;  %458 = vst.msk [vmem:[#allocation3 + $0x18] sm:$0xff] %vm450_vm0, %v1074_v0  ;;  %s433_s19 = scalar_lea.vmem %s1390_s0, %s893_s24  ;;  %v513_v24 = vadd.f32 %v503_v22, %v502_v21  ;;  %v543_v6 = vld [vmem:[%s1392_s2] sm:$0xff]  ;;  %v545_v8 = vld [vmem:[%s1392_s2 + $0x10] sm:$0xff]  ;;  %s440_s27 = scalar_lea.vmem %s1399_s9, %s894_s13 }
  0x38   : > { %v463_v1 = vld [vmem:[%s433_s19] sm:$0xff]  ;;  %v464_v2 = vld [vmem:[%s433_s19 + $0x8] sm:$0xff]  ;;  %v465_v3 = vld [vmem:[%s433_s19 + $0x10] sm:$0xff]  ;;  %s445_s23 = scalar_lea.vmem %s1400_s10, %s894_s13 }
  0x39   : > { %v471_v4 = vadd.f32 %v464_v2, %v463_v1  ;;  %v466_v5 = vld [vmem:[%s433_s19 + $0x18] sm:$0xff]  ;;  %v467_v13 = vld [vmem:[%s433_s19 + $0x20] sm:$0xff]  ;;  %v468_v14 = vld [vmem:[%s433_s19 + $0x28] sm:$0xff] }
  0x3a   : > { %v474_v11 = vadd.f32 %v466_v5, %v465_v3  ;;  %v477_v17 = vadd.f32 %v468_v14, %v467_v13  ;;  %508 = vadd.xlane.f32.xlu1 %v507_v12  ;;  %v469_v19 = vld [vmem:[%s433_s19 + $0x30] sm:$0xff]  ;;  %v470_v20 = vld [vmem:[%s433_s19 + $0x38] sm:$0xff]  ;;  %v544_v5 = vld [vmem:[%s1392_s2 + $0x8] sm:$0xff] }
  0x3b   : > { %472 = vadd.xlane.f32.xlu0 %v471_v4  ;;  %v480_v23 = vadd.f32 %v470_v20, %v469_v19  ;;  %v459_v26 = vld [vmem:[#allocation2] sm:$0xff]  ;;  %v460_v31 = vld [vmem:[#allocation2 + $0x8] sm:$0xff]  ;;  %v587_v15 = vld [vmem:[%s1393_s3 + $0x10] sm:$0xff] }
  0x3c   : > { %v461_v38 = vld [vmem:[#allocation2 + $0x10] sm:$0xff]  ;;  %v462_v45 = vld [vmem:[#allocation2 + $0x18] sm:$0xff]  ;;  %v585_v14 = vld [vmem:[%s1393_s3] sm:$0xff] }
  0x3d   : > { %v492_v27 = vld [vmem:[#allocation3] sm:$0xff]  ;;  %v493_v33 = vld [vmem:[#allocation3 + $0x8] sm:$0xff]  ;;  %v546_v19 = vld [vmem:[%s1392_s2 + $0x18] sm:$0xff] }
  0x3e   : > { %511 = vadd.xlane.f32.xlu1 %v510_v18  ;;  %v494_v39 = vld [vmem:[#allocation3 + $0x10] sm:$0xff]  ;;  %v495_v47 = vld [vmem:[#allocation3 + $0x18] sm:$0xff] }
  0x3f   : > { %475 = vadd.xlane.f32.xlu0 %v474_v11  ;;  %v586_v11 = vld [vmem:[%s1393_s3 + $0x8] sm:$0xff] }
  0x42   : > { %514 = vadd.xlane.f32.xlu1 %v513_v24 }
  0x43   : > { %478 = vadd.xlane.f32.xlu0 %v477_v17 }
  0x47   : > { %481 = vadd.xlane.f32.xlu0 %v480_v23 }
  0xc3   : > { %v506_v30 = vpop.xlane.xlu1 %505 }
  0xc4   : > { %v516_v32 = vadd.f32 %v506_v30, %v492_v27 }
  0xc6   : > { %520 = vst.msk [vmem:[#allocation3] sm:$0xff] %vm450_vm0, %v516_v32 }
  0xc7   : > { %v509_v36 = vpop.xlane.xlu1 %508 }
  0xc8   : > { %v473_v28 = vpop.xlane.xlu0 %472  ;;  %v517_v37 = vadd.f32 %v509_v36, %v493_v33 }
  0xc9   : > { %v483_v29 = vadd.f32 %v473_v28, %v459_v26 }
  0xca   : > { %521 = vst.msk [vmem:[#allocation3 + $0x8] sm:$0xff] %vm450_vm0, %v517_v37 }
  0xcb   : > { %488 = vst.msk [vmem:[#allocation2] sm:$0xff] %vm450_vm0, %v483_v29  ;;  %v512_v42 = vpop.xlane.xlu1 %511  ;;  %v588_v29 = vld [vmem:[%s1393_s3 + $0x18] sm:$0xff] }
  0xcc   : > { %v476_v34 = vpop.xlane.xlu0 %475  ;;  %v518_v44 = vadd.f32 %v512_v42, %v494_v39 }
  0xcd   : > { %v484_v35 = vadd.f32 %v476_v34, %v460_v31  ;;  %v535_v52 = vld [vmem:[#allocation3] sm:$0xff] }
  0xce   : > { %522 = vst.msk [vmem:[#allocation3 + $0x10] sm:$0xff] %vm450_vm0, %v518_v44  ;;  %v539_v55 = vmul.f32 0.00390625, %v535_v52 }
  0xcf   : > { %489 = vst.msk [vmem:[#allocation2 + $0x8] sm:$0xff] %vm450_vm0, %v484_v35  ;;  %v515_v50 = vpop.xlane.xlu1 %514 }
  0xd0   : > { %v479_v40 = vpop.xlane.xlu0 %478  ;;  %v519_v53 = vadd.f32 %v515_v50, %v495_v47 }
  0xd1   : > { %v485_v41 = vadd.f32 %v479_v40, %v461_v38  ;;  %v536_v56 = vld [vmem:[#allocation3 + $0x8] sm:$0xff] }
  0xd2   : > { %v527_v43 = vld [vmem:[#allocation2] sm:$0xff]  ;;  %523 = vst.msk [vmem:[#allocation3 + $0x18] sm:$0xff] %vm450_vm0, %v519_v53  ;;  %v540_v57 = vmul.f32 0.00390625, %v536_v56 }
  0xd3   : > { %v531_v46 = vmul.f32 0.00390625, %v527_v43  ;;  %490 = vst.msk [vmem:[#allocation2 + $0x10] sm:$0xff] %vm450_vm0, %v485_v41 }
  0xd4   : > { %v482_v48 = vpop.xlane.xlu0 %481 }
  0xd5   : > { %549 = vperm.xlu0 %955, %v531_v46   ;;  %v486_v49 = vadd.f32 %v482_v48, %v462_v45  ;;  %v537_v60 = vld [vmem:[#allocation3 + $0x10] sm:$0xff]  ;;  %v634_v48 = vlaneseq }
  0xd6   : > { %v528_v51 = vld [vmem:[#allocation2 + $0x8] sm:$0xff]  ;;  %v541_v61 = vmul.f32 0.00390625, %v537_v60  ;;  %v630_v60 = vld [vmem:[%s1395_s5] sm:$0xff] }
  0xd7   : > { %v532_v54 = vmul.f32 0.00390625, %v528_v51  ;;  %491 = vst.msk [vmem:[#allocation2 + $0x18] sm:$0xff] %vm450_vm0, %v486_v49  ;;  %v635_v52 = vshrl.u32 %v634_v48, 7 }
  0xd9   : > { %554 = vperm.xlu1 %956, %v532_v54   ;;  %v538_v0 = vld [vmem:[#allocation3 + $0x18] sm:$0xff]  ;;  %v627_v54 = vld [vmem:[%s1394_s4] sm:$0x1]  ;;  %v636_v56 = vsub.s32 0, %v635_v52 }
  0xda   : > { %v529_v58 = vld [vmem:[#allocation2 + $0x10] sm:$0xff]  ;;  %v542_v1 = vmul.f32 0.00390625, %v538_v0 }
  0xdb   : > { %v533_v59 = vmul.f32 0.00390625, %v529_v58 }
  0xdd   : > { %591 = vperm.xlu1 %956, %v539_v55  }
  0xde   : > { %v530_v62 = vld [vmem:[#allocation2 + $0x18] sm:$0xff] }
  0xdf   : > { %v534_v63 = vmul.f32 0.00390625, %v530_v62  ;;  %v632_v62 = vld [vmem:[%s1395_s5 + $0x10] sm:$0xff] }
  0xe1   : > { %596 = vperm.xlu1 %956, %v540_v57  }
  0xe5   : > { %559 = vperm.xlu1 %956, %v533_v59   ;;  %v631_v59 = vld [vmem:[%s1395_s5 + $0x8] sm:$0xff] }
  0xe9   : > { %601 = vperm.xlu1 %956, %v541_v61  }
  0xed   : > { %564 = vperm.xlu1 %956, %v534_v63   ;;  %v633_v63 = vld [vmem:[%s1395_s5 + $0x18] sm:$0xff] }
  0xf1   : > { %606 = vperm.xlu1 %956, %v542_v1  }
 0x154   : > { %v550_v7 = vpop.permute.xlu0 %549 }
 0x155   : > { %v567_v12 = vmul.f32 %v550_v7, %v543_v6  ;;  %v662_v6 = vld [vmem:[%s1397_s7] sm:$0xff]  ;;  %v663_v7 = vld [vmem:[%s1397_s7 + $0x8] sm:$0xff] }
 0x157   : > { %v572_v20 = vsel %vm571_vm1, %v567_v12, 0.0  ;;  %v664_v12 = vld [vmem:[%s1397_s7 + $0x10] sm:$0xff] }
 0x158   : > { %v555_v2 = vpop.permute.xlu1 %554 }
 0x159   : > { %v568_v10 = vmul.f32 %v555_v2, %v544_v5 }
 0x15b   : > { %v573_v17 = vsel %vm571_vm1, %v568_v10, 0.0 }
 0x15c   : > { %v592_v3 = vpop.permute.xlu1 %591  ;;  %v574_v24 = vadd.f32 %v573_v17, %v572_v20  ;;  %v655_v20 = vld [vmem:[%s1396_s6 + $0x8] sm:$0xff] }
 0x15d   : > { %v609_v21 = vmul.f32 %v592_v3, %v585_v14 }
 0x15f   : > { %v613_v30 = vsel %vm571_vm1, %v609_v21, 0.0  ;;  %v654_v21 = vld [vmem:[%s1396_s6] sm:$0xff] }
 0x160   : > { %v597_v4 = vpop.permute.xlu1 %596 }
 0x161   : > { %v610_v18 = vmul.f32 %v597_v4, %v586_v11 }
 0x163   : > { %v614_v26 = vsel %vm571_vm1, %v610_v18, 0.0 }
 0x164   : > { %v560_v9 = vpop.permute.xlu1 %559  ;;  %v615_v33 = vadd.f32 %v614_v26, %v613_v30  ;;  %v656_v26 = vld [vmem:[%s1396_s6 + $0x10] sm:$0xff] }
 0x165   : > { %v569_v13 = vmul.f32 %v560_v9, %v545_v8 }
 0x167   : > { %v575_v22 = vsel %vm571_vm1, %v569_v13, 0.0  ;;  %v665_v13 = vld [vmem:[%s1397_s7 + $0x18] sm:$0xff] }
 0x168   : > { %v602_v16 = vpop.permute.xlu1 %601  ;;  %v576_v28 = vadd.f32 %v575_v22, %v574_v24 }
 0x169   : > { %v611_v23 = vmul.f32 %v602_v16, %v587_v15 }
 0x16b   : > { %v616_v31 = vsel %vm571_vm1, %v611_v23, 0.0 }
 0x16c   : > { %v565_v25 = vpop.permute.xlu1 %564  ;;  %v617_v37 = vadd.f32 %v616_v31, %v615_v33 }
 0x16d   : > { %v570_v27 = vmul.f32 %v565_v25, %v546_v19 }
 0x16f   : > { %v577_v32 = vsel %vm571_vm1, %v570_v27, 0.0  ;;  %v657_v27 = vld [vmem:[%s1396_s6 + $0x18] sm:$0xff] }
 0x170   : > { %v578_v34 = vadd.f32 %v577_v32, %v576_v28  ;;  %v607_v35 = vpop.permute.xlu1 %606 }
 0x171   : > { %v612_v36 = vmul.f32 %v607_v35, %v588_v29 }
 0x172   : > { %v579_v38 = vrot.slane %v578_v34, 4 }
 0x173   : > { %v618_v39 = vsel %vm571_vm1, %v612_v36, 0.0  ;;  %v682_v36 = vld [vmem:[%s1398_s8] sm:$0xff] }
 0x174   : > { %v580_v40 = vadd.f32 %v579_v38, %v578_v34  ;;  %v619_v41 = vadd.f32 %v618_v39, %v617_v37  ;;  %v683_v37 = vld [vmem:[%s1398_s8 + $0x8] sm:$0xff] }
 0x176   : > { %v581_v42 = vrot.slane %v580_v40, 2  ;;  %v620_v43 = vrot.slane %v619_v41, 4 }
 0x178   : > { %v582_v44 = vadd.f32 %v581_v42, %v580_v40  ;;  %v621_v45 = vadd.f32 %v620_v43, %v619_v41 }
 0x17a   : > { %v622_v46 = vrot.slane %v621_v45, 2  ;;  %v583_v47 = vrot.slane %v582_v44, 1 }
 0x17c   : > { %v623_v49 = vadd.f32 %v622_v46, %v621_v45  ;;  %v584_v51 = vadd.f32 %v583_v47, %v582_v44  ;;  %v684_v46 = vld [vmem:[%s1398_s8 + $0x10] sm:$0xff]  ;;  %v685_v47 = vld [vmem:[%s1398_s8 + $0x18] sm:$0xff] }
 0x17e   : > { %v624_v50 = vrot.slane %v623_v49, 1 }
 0x180   : > { %v625_v53 = vadd.f32 %v624_v50, %v623_v49 }
 0x182   : > { %v626_v55 = vadd.f32 %v625_v53, %v584_v51 }
 0x184   : > { %v628_v57 = vadd.f32 %v627_v54, %v626_v55 }
 0x186   : > { %v629_v58 = vmax.f32 %v628_v57, 0.0 }
 0x188   : > { %v637_v61 = vrot.slane %v629_v58, %v636_v56 }
 0x18a   : > { %v639_v0 = vmul.f32 %v637_v61, %v631_v59  ;;  %v638_v1 = vmul.f32 %v637_v61, %v630_v60  ;;  %v640_v4 = vmul.f32 %v637_v61, %v632_v62  ;;  %v641_v5 = vmul.f32 %v637_v61, %v633_v63 }
 0x18b   : > { %v666_v10 = vmul.f32 %v662_v6, %v637_v61  ;;  %v667_v11 = vmul.f32 %v663_v7, %v637_v61  ;;  %v668_v16 = vmul.f32 %v664_v12, %v637_v61  ;;  %v669_v17 = vmul.f32 %v665_v13, %v637_v61 }
 0x18c   : > { %v645_v2 = vsel %vm571_vm1, %v639_v0, 0.0  ;;  %v642_v3 = vsel %vm571_vm1, %v638_v1, 0.0  ;;  %v648_v8 = vsel %vm571_vm1, %v640_v4, 0.0  ;;  %v651_v9 = vsel %vm571_vm1, %v641_v5, 0.0 }
 0x18d   : > { %646 = vadd.xlane.f32.xlu0 %v645_v2  ;;  %643 = vadd.xlane.f32.xlu1 %v642_v3  ;;  %v670_v14 = vsel %vm571_vm1, %v666_v10, 0.0  ;;  %v673_v15 = vsel %vm571_vm1, %v667_v11, 0.0  ;;  %v676_v18 = vsel %vm571_vm1, %v668_v16, 0.0  ;;  %v679_v19 = vsel %vm571_vm1, %v669_v17, 0.0 }
 0x191   : > { %649 = vadd.xlane.f32.xlu0 %v648_v8  ;;  %652 = vadd.xlane.f32.xlu1 %v651_v9 }
 0x195   : > { %671 = vadd.xlane.f32.xlu0 %v670_v14  ;;  %674 = vadd.xlane.f32.xlu1 %v673_v15 }
 0x199   : > { %677 = vadd.xlane.f32.xlu0 %v676_v18  ;;  %680 = vadd.xlane.f32.xlu1 %v679_v19 }
 0x21a   : > { %v647_v22 = vpop.xlane.xlu0 %646  ;;  %v644_v23 = vpop.xlane.xlu1 %643 }
 0x21b   : > { %v659_v24 = vadd.f32 %v655_v20, %v647_v22  ;;  %v658_v25 = vadd.f32 %v654_v21, %v644_v23 }
 0x21d   : > { %v691_v28 = vsub.f32 0.0, %v659_v24  ;;  %v690_v29 = vsub.f32 0.0, %v658_v25 }
 0x21e   : > { %v650_v30 = vpop.xlane.xlu0 %649  ;;  %v653_v31 = vpop.xlane.xlu1 %652 }
 0x21f   : > { %v696_v32 = vmul.f32 1.442695, %v691_v28  ;;  %v694_v33 = vmul.f32 1.442695, %v690_v29  ;;  %v660_v34 = vadd.f32 %v656_v26, %v650_v30  ;;  %v661_v35 = vadd.f32 %v657_v27, %v653_v31 }
 0x221   : > { %957 = vpow2.f32 %v696_v32  ;;  %v692_v38 = vsub.f32 0.0, %v660_v34  ;;  %v693_v39 = vsub.f32 0.0, %v661_v35 }
 0x222   : > { %959 = vpow2.f32 %v694_v33  ;;  %v672_v40 = vpop.xlane.xlu0 %671  ;;  %v675_v41 = vpop.xlane.xlu1 %674 }
 0x223   : > { %v698_v42 = vmul.f32 1.442695, %v692_v38  ;;  %v700_v43 = vmul.f32 1.442695, %v693_v39  ;;  %v686_v44 = vadd.f32 %v682_v36, %v672_v40  ;;  %v687_v45 = vadd.f32 %v683_v37, %v675_v41 }
 0x225   : > { %961 = vpow2.f32 %v698_v42  ;;  %v718_v48 = vsub.f32 0.0, %v686_v44  ;;  %v719_v49 = vsub.f32 0.0, %v687_v45 }
 0x226   : > { %963 = vpow2.f32 %v700_v43  ;;  %v678_v50 = vpop.xlane.xlu0 %677  ;;  %v681_v51 = vpop.xlane.xlu1 %680 }
 0x227   : > { %v722_v52 = vmul.f32 1.442695, %v718_v48  ;;  %v724_v53 = vmul.f32 1.442695, %v719_v49  ;;  %v688_v54 = vadd.f32 %v684_v46, %v678_v50  ;;  %v689_v55 = vadd.f32 %v685_v47, %v681_v51 }
 0x229   : > { %965 = vpow2.f32 %v722_v52  ;;  %v720_v56 = vsub.f32 0.0, %v688_v54  ;;  %v721_v57 = vsub.f32 0.0, %v689_v55 }
 0x22a   : > { %967 = vpow2.f32 %v724_v53 }
 0x22b   : > { %v958_v58 = vpop.eup %957  ;;  %v726_v59 = vmul.f32 1.442695, %v720_v56  ;;  %v728_v62 = vmul.f32 1.442695, %v721_v57 }
 0x22c   : > { %v960_v60 = vpop.eup %959  ;;  %v703_v61 = vadd.f32 1.0, %v958_v58 }
 0x22d   : > { %v702_v63 = vadd.f32 1.0, %v960_v60  ;;  %969 = vpow2.f32 %v726_v59 }
 0x22e   : > { %971 = vrcp.f32 %v703_v61 }
 0x22f   : > { %v962_v0 = vpop.eup %961  ;;  %973 = vrcp.f32 %v702_v63 }
 0x230   : > { %v964_v1 = vpop.eup %963  ;;  %v704_v2 = vadd.f32 1.0, %v962_v0  ;;  %975 = vpow2.f32 %v728_v62 }
 0x231   : > { %v705_v3 = vadd.f32 1.0, %v964_v1 }
 0x232   : > { %977 = vrcp.f32 %v704_v2 }
 0x233   : > { %v966_v4 = vpop.eup %965  ;;  %979 = vrcp.f32 %v705_v3 }
 0x234   : > { %v968_v5 = vpop.eup %967  ;;  %v730_v6 = vadd.f32 1.0, %v966_v4 }
 0x235   : > { %v731_v7 = vadd.f32 1.0, %v968_v5 }
 0x236   : > { %981 = vrcp.f32 %v730_v6 }
 0x237   : > { %v970_v8 = vpop.eup %969  ;;  %983 = vrcp.f32 %v731_v7 }
 0x238   : > { %v972_v9 = vpop.eup %971  ;;  %v732_v10 = vadd.f32 1.0, %v970_v8 }
 0x239   : > { %v974_v11 = vpop.eup %973  ;;  %715 = vst.msk [vmem:[%s440_s27 + $0x8] sm:$0xff] %vm450_vm0, %v972_v9 }
 0x23a   : > { %v976_v12 = vpop.eup %975  ;;  %714 = vst.msk [vmem:[%s440_s27] sm:$0xff] %vm450_vm0, %v974_v11  ;;  %985 = vrcp.f32 %v732_v10 }
 0x23b   : > { %v733_v13 = vadd.f32 1.0, %v976_v12 }
 0x23c   : > { %v978_v14 = vpop.eup %977 }
 0x23d   : > { %v980_v15 = vpop.eup %979  ;;  %716 = vst.msk [vmem:[%s440_s27 + $0x10] sm:$0xff] %vm450_vm0, %v978_v14  ;;  %987 = vrcp.f32 %v733_v13 }
 0x23e   : > { %717 = vst.msk [vmem:[%s440_s27 + $0x18] sm:$0xff] %vm450_vm0, %v980_v15 }
 0x240   : > { %v982_v16 = vpop.eup %981 }
 0x241   : > { %v984_v17 = vpop.eup %983  ;;  %742 = vst.msk [vmem:[%s445_s23] sm:$0xff] %vm450_vm0, %v982_v16 }
 0x242   : > { %743 = vst.msk [vmem:[%s445_s23 + $0x8] sm:$0xff] %vm450_vm0, %v984_v17 }
 0x244   : > { %v986_v18 = vpop.eup %985 }
 0x245   : > { %744 = vst.msk [vmem:[%s445_s23 + $0x10] sm:$0xff] %vm450_vm0, %v986_v18 }
 0x247   : > { %v988_v19 = vpop.eup %987 }
 0x248   : > { %745 = vst.msk [vmem:[%s445_s23 + $0x18] sm:$0xff] %vm450_vm0, %v988_v19 }
 0x249 PF: > { %s24_s18 = sadd.s32 1, %s1069_s18   ;;  %s1404_s13 = smov %s1053_s14 }
 0x24a   : > { %p21_p7 = scmp.ge.s32.totalorder %s24_s18, 4   ;;  %s1405_s14 = smov %s1057_s15 }
 0x24b   : > { %s1406_s15 = smov %s1180_s25  ;;  %s1407_s16 = smov %s1065_s17 }
 0x24c   : > { %s1408_s17 = smov %s1410_s20  ;;  %23 = sbr.rel (!%p21_p7) target bundleno = 4 (0x4), region = 119 }
 0x253   :  { %783 = vsyncpa [#allocation5], 1 }
 0x254   :  { %785 = vsyncpa [#allocation5 + $0x1], 1 }

</bundles_post_ra>
